<compile_context>
chip_gen: v7x
topology: tpu7x:2x2x1
jax: 0.10.0
libtpu: 0.0.40
codegen_flags: <defaults>
</compile_context>

<pallas_src>
import jax
import jax.numpy as jnp
from jax import lax
from jax.experimental import pallas as pl
from jax.experimental.pallas import tpu as pltpu


def _lgc_kernel(x_ref, scale_ref, shift_ref, w_ref, o_ref):
    """BN(inference) + ReLU + masked 1x1 conv on one (B_tile, C_in, t_hw) tile."""
    b_tile, c_in, t_hw = x_ref.shape
    w = w_ref[...]                                            # (C_out, C_in) bf16
    # Hoist the BN broadcasts out of the per-image loop (JAX does not CSE them).
    scale = jnp.broadcast_to(scale_ref[...], (c_in, t_hw))    # (C_in, t_hw) f32
    shift = jnp.broadcast_to(shift_ref[...], (c_in, t_hw))

    def one_image(b):
        x = x_ref[b].astype(jnp.float32)                      # (C_in, t_hw)
        xb = jnp.maximum(x * scale + shift, 0.0)              # BN + ReLU (f32)
        xb = xb.astype(jnp.bfloat16)                          # cheap VPU cast -> bf16 MXU feed
        acc = jnp.dot(w, xb, preferred_element_type=jnp.float32)
        o_ref[b] = acc.astype(o_ref.dtype)                    # HW stays lane-dense

    if b_tile == 1:
        one_image(0)
    else:
        def body(b, carry):
            one_image(b)
            return carry
        lax.fori_loop(0, b_tile, body, 0, unroll=(b_tile <= 8))


def _select_tiles(N, C_in, C_out, HW, x_itemsize, out_itemsize, vmem_cap):
    """Pick (b_tile, t_hw): multi-MiB slab per grid step, working set in budget."""
    TARGET_X_TILE_BYTES = 6 * 1024 * 1024        # 2-8 MiB sweet spot per step

    # Per HW-column working-set bytes at b_tile = 1:
    #   double-buffered x + out tiles, xb f32 + bf16 temps, f32 acc (+ cast).
    per_col = (2 * C_in * x_itemsize + 2 * C_out * out_itemsize
               + 6 * C_in + (4 + out_itemsize) * C_out)

    # v7x: 64 MiB/TC physical -> keep per-step working set under ~28 MiB;
    # v5e/v6e: 128 MiB -> allow up to ~48 MiB.
    budget = max(8 * 1024 * 1024, min(48 * 1024 * 1024, (vmem_cap * 7) // 16))

    cols_fit = max(128, (budget // per_col) // 128 * 128)
    cols_target = max(128, (TARGET_X_TILE_BYTES // (C_in * x_itemsize)) // 128 * 128)
    cols = min(cols_fit, cols_target)

    if HW > cols:
        b_tile, t_hw = 1, cols                   # tile the spatial axis (mult. of 128)
    else:
        t_hw = HW                                # small map: fold batch images
        b_tile = max(1, min(N, cols // HW))

    # v7x has 2 TensorCores: make sure >= 2 parallel grid blocks exist when possible.
    if pl.cdiv(N, b_tile) * pl.cdiv(HW, t_hw) < 2:
        if N >= 2:
            b_tile = (N + 1) // 2
        elif HW >= 256:
            t_hw = (((HW + 1) // 2 + 127) // 128) * 128

    return b_tile, t_hw


def learned_group_conv_forward(x_nchw, params):
    """Fused BN + ReLU + masked 1x1 conv (groups=1, stride=1, pad=0).

    x_nchw: (N, C_in, H, W).  Returns (N, C_out, H, W) in x's dtype.
    """
    weight = params["conv_weight"]          # (C_out, C_in, 1, 1)
    mask = params["mask"]                   # (C_out, C_in, 1, 1)
    gamma = params["bn_gamma"]              # (C_in,)
    beta = params["bn_beta"]                # (C_in,)
    mean = params["bn_running_mean"]        # (C_in,)
    var = params["bn_running_var"]          # (C_in,)
    eps = params["bn_eps"]

    N, C_in, H, W = x_nchw.shape
    C_out = weight.shape[0]
    HW = H * W
    out_dtype = x_nchw.dtype

    # --- grid-invariant precompute (tiny, plain JAX) -------------------------
    scale = (gamma.astype(jnp.float32)
             * lax.rsqrt(var.astype(jnp.float32) + jnp.float32(eps)))
    shift = beta.astype(jnp.float32) - mean.astype(jnp.float32) * scale
    scale2d = scale.reshape(C_in, 1)
    shift2d = shift.reshape(C_in, 1)
    # masked weight computed once; fed to the MXU as bf16 (accumulation stays f32).
    w2d = (weight.reshape(C_out, C_in) * mask.reshape(C_out, C_in)).astype(jnp.bfloat16)

    # NCHW -> (N, C_in, HW): pure reshape in the input's native dtype
    # (no transpose, no dtype-conversion pass over HBM).
    x3 = x_nchw.reshape(N, C_in, HW)

    # --- generation-aware tile selection -------------------------------------
    try:
        vmem_cap = int(getattr(pltpu.get_tpu_info(), "vmem_capacity_bytes",
                               64 * 1024 * 1024))
    except Exception:  # pragma: no cover - fallback if query unsupported
        vmem_cap = 64 * 1024 * 1024          # conservative (v7x per-TC VMEM)

    xi = x3.dtype.itemsize
    oi = jnp.dtype(out_dtype).itemsize
    b_tile, t_hw = _select_tiles(N, C_in, C_out, HW, xi, oi, vmem_cap)

    n_b_blocks = pl.cdiv(N, b_tile)
    n_hw_blocks = pl.cdiv(HW, t_hw)

    # Put the larger parallel axis first so megacore sharding (v7x) always has
    # work on both TensorCores, including the N=1 inference case.
    if n_hw_blocks >= n_b_blocks:
        grid = (n_hw_blocks, n_b_blocks)
        io_map = lambda j, nb: (nb, 0, j)
        cst_map = lambda j, nb: (0, 0)
    else:
        grid = (n_b_blocks, n_hw_blocks)
        io_map = lambda nb, j: (nb, 0, j)
        cst_map = lambda nb, j: (0, 0)

    # Scoped-VMEM limit covering pipeline double-buffers AND in-kernel temps.
    work_bytes = (2 * b_tile * t_hw * (C_in * xi + C_out * oi)      # x/out dbl-buffers
                  + t_hw * (6 * C_in + (4 + oi) * C_out)            # xb f32+bf16, f32 acc
                  + 2 * (C_out * C_in * 2 + 2 * C_in * 4))          # w/scale/shift dbl-buf
    vmem_limit = int(max(16 * 1024 * 1024,
                         min(work_bytes + 4 * 1024 * 1024, vmem_cap // 2)))

    cost = pl.CostEstimate(
        flops=2 * N * HW * C_in * C_out,
        transcendentals=0,
        bytes_accessed=int(N * HW * (C_in * xi + C_out * oi)
                           + C_in * C_out * 2 + 2 * C_in * 4),
    )

    out3 = pl.pallas_call(
        _lgc_kernel,
        out_shape=jax.ShapeDtypeStruct((N, C_out, HW), out_dtype),
        grid_spec=pltpu.PrefetchScalarGridSpec(
            num_scalar_prefetch=0,
            grid=grid,
            in_specs=[
                pl.BlockSpec((b_tile, C_in, t_hw), io_map),   # x tile (NCHW-native)
                pl.BlockSpec((C_in, 1), cst_map),             # BN scale
                pl.BlockSpec((C_in, 1), cst_map),             # BN shift
                pl.BlockSpec((C_out, C_in), cst_map),         # masked weight (bf16)
            ],
            out_specs=pl.BlockSpec((b_tile, C_out, t_hw), io_map),
        ),
        compiler_params=pltpu.CompilerParams(
            dimension_semantics=("parallel", "parallel"),
            vmem_limit_bytes=vmem_limit,
        ),
        cost_estimate=cost,
    )(x3, scale2d, shift2d, w2d)

    # (N, C_out, HW) -> NCHW: pure reshape, no transpose.
    return out3.reshape(N, C_out, H, W)


def _reference_forward(x_nchw, params):
    """Pure-JAX f32 reference of the same forward pass (for verification)."""
    weight = params["conv_weight"].reshape(
        params["conv_weight"].shape[0], params["conv_weight"].shape[1])
    mask = params["mask"].reshape(weight.shape)
    gamma, beta = params["bn_gamma"], params["bn_beta"]
    mean, var, eps = (params["bn_running_mean"], params["bn_running_var"],
                      params["bn_eps"])

    scale = gamma * lax.rsqrt(var + eps)
    shift = beta - mean * scale
    x = x_nchw * scale[None, :, None, None] + shift[None, :, None, None]
    x = jnp.maximum(x, 0.0)
    w = weight * mask                                   # (C_out, C_in)
    # 1x1 conv == per-pixel matmul over channels.
    return jnp.einsum("nchw,oc->nohw", x, w)


if __name__ == "__main__":
    key = jax.random.PRNGKey(0)
    N, C_in, H, W = 2, 4, 16, 16
    C_out = 8
    groups = 4            # in_channels % groups == 0, out_channels % groups == 0
    condense_factor = 4   # in_channels % condense_factor == 0

    k_x, k_w, k_g, k_b, k_m, k_v = jax.random.split(key, 6)
    x = jax.random.normal(k_x, (N, C_in, H, W), dtype=jnp.float32)

    params = {
        # Conv2d(in, out, kernel_size=1, bias=False) weight: (C_out, C_in, 1, 1)
        "conv_weight": jax.random.normal(k_w, (C_out, C_in, 1, 1), jnp.float32) * 0.1,
        # _mask buffer: ones (global_progress=0.0 -> stage 0 -> no dropping yet)
        "mask": jnp.ones((C_out, C_in, 1, 1), jnp.float32),
        # BatchNorm2d(in_channels) parameters / running stats (inference mode)
        "bn_gamma": 1.0 + 0.1 * jax.random.normal(k_g, (C_in,), jnp.float32),
        "bn_beta": 0.1 * jax.random.normal(k_b, (C_in,), jnp.float32),
        "bn_running_mean": 0.1 * jax.random.normal(k_m, (C_in,), jnp.float32),
        "bn_running_var": jnp.abs(jax.random.normal(k_v, (C_in,), jnp.float32)) + 0.5,
        "bn_eps": 1e-5,
    }

    out = learned_group_conv_forward(x, params)
    out = jax.block_until_ready(out)

    ref = _reference_forward(x, params)
    assert out.shape == (N, C_out, H, W), out.shape
    max_err = float(jnp.max(jnp.abs(out - ref)))
    # bf16 MXU operands (f32 accumulation) -> loosened tolerance vs f32 reference.
    assert jnp.allclose(out, ref, atol=5e-2, rtol=5e-2), max_err

    print("KERNEL_OK")
</pallas_src>

<mosaic_0001>
module attributes {stable_mosaic.version = 11 : i64} {
  func.func @_lgc_kernel(%arg0: i32, %arg1: i32, %arg2: memref<1x4x256xf32, #tpu.memory_space<vmem>>, %arg3: memref<4x1xf32, #tpu.memory_space<vmem>>, %arg4: memref<4x1xf32, #tpu.memory_space<vmem>>, %arg5: memref<8x4xbf16, #tpu.memory_space<vmem>>, %arg6: memref<1x8x256xf32, #tpu.memory_space<vmem>>) attributes {dimension_semantics = [#tpu.dimension_semantics<parallel>, #tpu.dimension_semantics<parallel>], iteration_bounds = array<i64: 2, 1>, scalar_prefetch = 0 : i64, scratch_operands = 0 : i64, tpu.core_type = #tpu.core_type<tc>, window_params = [{transform_indices = @transform_0, window_bounds = array<i64: 1, 4, 256>}, {pipeline_mode = #tpu.pipeline_mode<synchronous>, transform_indices = @transform_1, window_bounds = array<i64: 4, 1>}, {pipeline_mode = #tpu.pipeline_mode<synchronous>, transform_indices = @transform_2, window_bounds = array<i64: 4, 1>}, {pipeline_mode = #tpu.pipeline_mode<synchronous>, transform_indices = @transform_3, window_bounds = array<i64: 8, 4>}, {transform_indices = @transform_4, window_bounds = array<i64: 1, 8, 256>}]} {
    %c0 = arith.constant 0 : index
    %c0_0 = arith.constant 0 : index
    %0 = vector.load %arg5[%c0, %c0_0] : memref<8x4xbf16, #tpu.memory_space<vmem>>, vector<8x4xbf16>
    %c0_1 = arith.constant 0 : index
    %c0_2 = arith.constant 0 : index
    %1 = vector.load %arg3[%c0_1, %c0_2] : memref<4x1xf32, #tpu.memory_space<vmem>>, vector<4x1xf32>
    %2 = vector.shape_cast %1 : vector<4x1xf32> to vector<4x1xf32>
    %3 = vector.broadcast %2 : vector<4x1xf32> to vector<4x256xf32>
    %c0_3 = arith.constant 0 : index
    %c0_4 = arith.constant 0 : index
    %4 = vector.load %arg4[%c0_3, %c0_4] : memref<4x1xf32, #tpu.memory_space<vmem>>, vector<4x1xf32>
    %5 = vector.shape_cast %4 : vector<4x1xf32> to vector<4x1xf32>
    %6 = vector.broadcast %5 : vector<4x1xf32> to vector<4x256xf32>
    %c0_5 = arith.constant 0 : index
    %c0_6 = arith.constant 0 : index
    %c0_7 = arith.constant 0 : index
    %7 = vector.load %arg2[%c0_5, %c0_6, %c0_7] : memref<1x4x256xf32, #tpu.memory_space<vmem>>, vector<1x4x256xf32>
    %8 = vector.shape_cast %7 : vector<1x4x256xf32> to vector<4x256xf32>
    %9 = arith.mulf %8, %3 : vector<4x256xf32>
    %10 = arith.addf %9, %6 : vector<4x256xf32>
    %cst = arith.constant 0.000000e+00 : f32
    %11 = vector.broadcast %cst : f32 to vector<4x256xf32>
    %12 = arith.maximumf %10, %11 : vector<4x256xf32>
    %13 = arith.truncf %12 : vector<4x256xf32> to vector<4x256xbf16>
    %cst_8 = arith.constant dense<0.000000e+00> : vector<8x256xf32>
    %14 = tpu.matmul %0, %13, %cst_8 {dimension_numbers = #tpu.dot_dimension_numbers<[1], [0], [0], [1], [0, 0, 1, 1], [], []>} : vector<8x4xbf16>, vector<4x256xbf16>, vector<8x256xf32> -> vector<8x256xf32>
    %c0_9 = arith.constant 0 : index
    %c0_10 = arith.constant 0 : index
    %c0_11 = arith.constant 0 : index
    %15 = vector.load %arg6[%c0_9, %c0_10, %c0_11] : memref<1x8x256xf32, #tpu.memory_space<vmem>>, vector<1x8x256xf32>
    %16 = vector.shape_cast %15 : vector<1x8x256xf32> to vector<8x256xf32>
    %17 = vector.shape_cast %14 : vector<8x256xf32> to vector<1x8x256xf32>
    tpu.vector_store %arg6[%c0_9, %c0_10, %c0_11], %17 {strides = array<i32>} : memref<1x8x256xf32, #tpu.memory_space<vmem>>, vector<1x8x256xf32>,
    return
  }
  func.func @transform_0(%arg0: i32, %arg1: i32) -> (i32, i32, i32) {
    %c0_i32 = arith.constant 0 : i32
    %c0_i32_0 = arith.constant 0 : i32
    return %arg0, %c0_i32, %arg1 : i32, i32, i32
  }
  func.func @transform_1(%arg0: i32, %arg1: i32) -> (i32, i32) {
    %c0_i32 = arith.constant 0 : i32
    %c0_i32_0 = arith.constant 0 : i32
    %c0_i32_1 = arith.constant 0 : i32
    return %c0_i32, %c0_i32_0 : i32, i32
  }
  func.func @transform_2(%arg0: i32, %arg1: i32) -> (i32, i32) {
    %c0_i32 = arith.constant 0 : i32
    %c0_i32_0 = arith.constant 0 : i32
    %c0_i32_1 = arith.constant 0 : i32
    return %c0_i32, %c0_i32_0 : i32, i32
  }
  func.func @transform_3(%arg0: i32, %arg1: i32) -> (i32, i32) {
    %c0_i32 = arith.constant 0 : i32
    %c0_i32_0 = arith.constant 0 : i32
    %c0_i32_1 = arith.constant 0 : i32
    return %c0_i32, %c0_i32_0 : i32, i32
  }
  func.func @transform_4(%arg0: i32, %arg1: i32) -> (i32, i32, i32) {
    %c0_i32 = arith.constant 0 : i32
    %c0_i32_0 = arith.constant 0 : i32
    return %arg0, %c0_i32, %arg1 : i32, i32, i32
  }
}

</mosaic_0001>

<bundles_post_ra>
// kernel: tpu_custom_call.1
= control target key start
LH: loop header
LB: loop body
LE: loop exit
PB: predicated region body
PF: predicated region fallthrough
CT: control target
= control target key end

     0   :  { %9 = vsyncpa [#allocation3], 0  ;;  %s835_s0 = inlined_call_operand.hbm [shape: f32[2,4,256], index: 0, kind: input, shape index: {}]   ;;  %s836_s1 = inlined_call_operand.vmem [shape: f32[4,1], index: 1, kind: input, shape index: {}]   ;;  %s837_s2 = inlined_call_operand.vmem [shape: f32[4,1], index: 2, kind: input, shape index: {}]   ;;  %s838_s3 = inlined_call_operand.vmem [shape: bf16[8,4], index: 3, kind: input, shape index: {}]   ;;  %s839_s4 = inlined_call_operand.hbm [shape: f32[2,8,256], index: 4, kind: output, shape index: {}]  }
   0x1   :  { %11 = vsyncpa [#allocation3 + $0x1], 0 }
   0x2   :  { %12 = vsyncpa [#allocation4], 0 }
   0x3   :  { %14 = vsyncpa [#allocation4 + $0x1], 0  ;;  %s653_s15 = smov 0   ;;  %s655_s16 = smov 0  }
   0x4   :  { %s657_s17 = smov 0   ;;  %s659_s18 = smov 0  }
   0x5   :  { %s661_s19 = smov 0   ;;  %s663_s20 = smov 0  }
   0x6 LB: > { %s426_s21 = sadd.s32 4294967295, %s622_s20   ;;  %s427_s22 = sadd.s32 4294967294, %s622_s20   ;;  %s622_s20 = sphi %s663_s20, %s20_s20   ;;  %s618_s19 = sphi %s661_s19, %s855_s19   ;;  %s614_s18 = sphi %s659_s18, %s854_s18   ;;  %s610_s17 = sphi %s657_s17, %s853_s17   ;;  %s606_s16 = sphi %s655_s16, %s852_s16   ;;  %s602_s15 = sphi %s653_s15, %s851_s15  }
   0x7   : > { %s32_s23 = sadd.s32 1, %s618_s19  ;;  %s41_s24 = sadd.s32 1, %s610_s17 }
   0x8   : > { %p34_p0 = scmp.ge.s32.totalorder %s32_s23, 2  ;;  %p48_p1 = scmp.ne.s32.totalorder %s610_s17, %s606_s16 }
   0x9   : > { %p49_p2 = scmp.eq.s32.totalorder %s622_s20, 0  ;;  %p54_p3 = scmp.ne.s32.totalorder %s606_s16, %s602_s15 }
   0xa   : > { %s857_s23 = smov (%p34_p0, %s32_s23), 0  ;;  %p55_p5 = scmp.eq.s32.totalorder %s426_s21, 0 }
   0xb   : > { %p694_p4 = por %p49_p2, %p48_p1  ;;  %s36_s26 = ssub.s32 %s618_s19, %s857_s23 }
   0xc   : > { %p143_p6 = scmp.eq.s32.totalorder %s426_s21, 1  ;;  %p39_p7 = scmp.eq.s32.totalorder %s36_s26, 0 }
   0xd   : > { %p700_p8 = por %p55_p5, %p54_p3  ;;  %p149_p10 = scmp.eq.s32.totalorder %s427_s22, 1 }
   0xe   : > { %p704_p9 = por %p143_p6, %p48_p1  ;;  %p457_p13 = scmp.lt.s32.totalorder %s622_s20, 2 }
   0xf   : > { %s709_s29 = scalar_select %p39_p7, %s610_s17, %s41_s24  }
  0x10   : > { %s843_s28 = scalar_select %p704_p9, 1, 0 }
  0x11   : > { %p711_p11 = por %p149_p10, %p54_p3  ;;  %s178_s5 = sand.u32 1, %s610_s17  }
  0x12   : > { %s430_s6 = sshll.u32 %s178_s5, 3  ;;  %s443_s7 = sshll.u32 %s618_s19, 7 }
  0x13   : > { %s844_s30 = scalar_select %p711_p11, 1, 0 }
  0x14   : > { %s722_s10 = scalar_lea.hbm %s835_s0, %s443_s7  ;;  %s182_s11 = scalar_lea.vmem [#allocation2], %s430_s6 }
  0x15   : > { %s192_s12 = sshll.u32 %s182_s11, 4  ;;  %p728_p0 = pnand %p457_p13, %p694_p4  ;;  %s724_s12 = int_to_ptr.vmem [resolvable:$true] %s192_s12 }
  0x16   : > { %s179_s14 = scalar_lea.sflag [#allocation3], %s178_s5  ;;  %s510_s21 = scalar_lea.hbm %s722_s10, 128 }
  0x17   : > { %p511_p3 = scmp.ne.s32.totalorder %s722_s10, %s510_s21  ;;  %p512_p5 = pneg %p728_p0 }
  0x18   : > { %s515_s25 = scalar_lea.hbm %s835_s0, 256  ;;  %p516_p4 = scmp.lt.u32.totalorder %s722_s10, %s835_s0 }
  0x19   : > { %p513_p6 = pnand %p512_p5, %p511_p3  ;;  %p517_p10 = scmp.lt.u32.totalorder %s515_s25, %s510_s21 }
  0x1a   : > { %p519_p12 = scmp.lt.u32.totalorder %s510_s21, %s722_s10 }
  0x1b   : > { %p514_p7 = pneg %p513_p6  ;;  %p518_p13 = por %p517_p10, %p516_p4 }
  0x1d   : > { %p520_p1 = por %p519_p12, %p518_p13 }
  0x1f   : > { %p521_p2 = pnand %p520_p1, %p514_p7 }
  0x21   : > { %524 = shalt.err (!%p521_p2)
}
  0x22   : > { %s525_s5 = scalar_lea.vmem %s724_s12, 128  ;;  %s624_s7 = smov [#allocation2]  }
  0x23   : > { %p526_p3 = scmp.ne.s32.totalorder %s724_s12, %s525_s5  ;;  %s530_s8 = sshll.u32 %s624_s7, 4  ;;  %s531_s8 = int_to_ptr.vmem [resolvable:$false] %s530_s8 }
  0x24   : > { %s532_s9 = scalar_lea.vmem %s531_s8, 256  ;;  %p533_p9 = scmp.lt.s32.totalorder %s724_s12, %s531_s8 }
  0x25   : > { %p528_p6 = pnand %p526_p3, %p512_p5  ;;  %p534_p4 = scmp.lt.s32.totalorder %s532_s9, %s525_s5 }
  0x27   : > { %p529_p11 = pneg %p528_p6  ;;  %p535_p10 = por %p534_p4, %p533_p9 }
  0x29   : > { %p536_p12 = pnand %p535_p10, %p529_p11 }
  0x2b   : > { %539 = shalt.err (!%p536_p12)
}
  0x2c   : > { %452 = dma.hbm_to_vmem [thread:$0]  (!%p728_p0), %s722_s10, 128, %s724_s12, %s179_s14  }
  0x2d   : > { %p846_p1 = scmp.lt.s32.totalorder %s622_s20, 3  ;;  %p847_p2 = scmp.ge.s32.totalorder %s622_s20, 1 }
  0x2f   : > { %p198_p5 = pnand %p847_p2, %p846_p1 }
  0x30   : > { %s764_s11 = sand.u32 (!%p198_p5), 1, %s606_s16  }
  0x31   : > { %201 = sbr.rel (%p198_p5) target bundleno = 433 (0x1b1), region = 36  ;;  %s434_s21 = sshll.u32 (!%p198_p5), %s764_s11, 3 }
  0x32   : > { %s204_s22 = scalar_lea.sflag (!%p198_p5), [#allocation3], %s764_s11  ;;  %s207_s24 = scalar_lea.vmem (!%p198_p5), [#allocation2], %s434_s21 }
  0x38   : > { %593 = dma.done.wait (%p700_p8), %s204_s22, 128  }
  0x39   : > { %595 = vsyncadd (%p700_p8), %s204_s22, 4294967168  ;;  %v625_v0 = vmov 0   ;;  %v236_v1 = vld [vmem:[%s836_s1] sm:$0xf]  ;;  %v626_v3 = vmov 839922192   ;;  %v250_v5 = vlaneseq }
  0x3a   : > { %509 = vset.pattern.permute.xlu0 %v625_v0  ;;  %314 = vmatprep.mubr.bf16.mxu0 %v625_v0  ;;  %v241_v2 = vld [vmem:[%s837_s2] sm:$0xf]  ;;  %v248_v4 = vunpack.c.l.s4 %v626_v3  ;;  %vm275_vm0 = vcmask 1041408   ;;  %vm271_vm1 = vcmask 31744   ;;  %s435_s26 = sshll.u32 %s764_s11, 4  ;;  %s444_s7 = sshll.u32 %s614_s18, 8 }
  0x3b   : > { %239 = vperm.xlu0 %509, %v236_v1   ;;  %v251_v7 = vshrl.u32 %v250_v5, 7  ;;  %v246_v11 = vld [vmem:[%s207_s24] sm:$0xff]  ;;  %s231_s6 = scalar_lea.vmem [#allocation5], %s435_s26  ;;  %s788_s21 = scalar_lea.hbm %s839_s4, %s444_s7 }
  0x3c   : > { %v249_v6 = vunpack.c.0.s8 %v248_v4  ;;  %v235_v21 = vld [vmem:[%s838_s3] sm:$0xf]  ;;  %s342_s5 = sshll.u32 %s231_s6, 4  ;;  %s326_s22 = scalar_lea.sflag [#allocation4], %s764_s11  ;;  %s783_s5 = int_to_ptr.vmem [resolvable:$true] %s342_s5 }
  0x3d   : > { %s540_s24 = scalar_lea.vmem %s783_s5, 256  ;;  %p848_p9 = scmp.ne.s32.totalorder %s843_s28, 0 }
  0x3e   : > { %v252_v8 = vsub.s32 %v249_v6, %v251_v7  ;;  %p541_p8 = scmp.ne.s32.totalorder %s783_s5, %s540_s24  ;;  %s627_s18 = smov [#allocation5]  }
  0x3f   : > { %244 = vperm.xlu0 %509, %v241_v2   ;;  %s544_s10 = sshll.u32 %s627_s18, 4  ;;  %s545_s10 = int_to_ptr.vmem [resolvable:$false] %s544_s10 }
  0x40   : > { %p542_p11 = pnand %p541_p8, %p848_p9  ;;  %s546_s12 = scalar_lea.vmem %s545_s10, 512 }
  0x41   : > { %p547_p7 = scmp.lt.s32.totalorder %s783_s5, %s545_s10  ;;  %p548_p13 = scmp.lt.s32.totalorder %s546_s12, %s540_s24 }
  0x42   : > { %p543_p0 = pneg %p542_p11 }
  0x43   : > { %p549_p3 = por %p548_p13, %p547_p7 }
  0x45   : > { %p550_p6 = pnand %p549_p3, %p543_p0 }
  0xba   : > { %v240_v9 = vpop.permute.xlu0 %239 }
  0xbb   : > { %v253_v10 = vrot.slane %v240_v9, %v252_v8 }
  0xbd   : > { %v255_v13 = vmul.f32 %v253_v10, %v246_v11 }
  0xbe   : > { %v245_v12 = vpop.permute.xlu0 %244 }
  0xbf   : > { %v262_v14 = vrot.slane %v245_v12, %v252_v8 }
  0xc1   : > { %v264_v15 = vadd.f32 %v262_v14, %v255_v13 }
  0xc3   : > { %v265_v16 = vmax.f32 %v264_v15, 0.0 }
  0xc5   : > { %v267_v17 = vcombine.high %v265_v16, %v265_v16  ;;  %v269_v18 = vpack.c.bf16 %v265_v16, %v265_v16 }
  0xc7   : > { %v270_v19 = vpack.c.bf16 %v267_v17, %v267_v17  ;;  %v277_v20 = vsel %vm275_vm0, %v269_v18, 0 }
  0xc9   : > { %436 = vmatprep.subr.msk.bf16.mxu0 %vm275_vm0, %v270_v19 }
  0xca   : > { %283 = vmatpush1.bf16.msra.mxu0 %v277_v20 }
  0xcd   : > { %437 = vmatmul.mubr.msk.bf16.vlgmr.msra.gmra.mrb[0].mxu0 %vm271_vm1, %v235_v21 }
 0x1a0   : > { %v316_v22 = vpop.f32.mrb[0].mxu0 }
 0x1a1   : > { %323 = vst [vmem:[%s231_s6] sm:$0xff] %v316_v22  ;;  %v318_v23 = vpop.f32.mrb[1].mxu0 }
 0x1a2   : > { %324 = vst [vmem:[%s231_s6 + $0x8] sm:$0xff] %v318_v23  ;;  %v320_v24 = vpop.f32.mrb[2].mxu0 }
 0x1a3   : > { %v321_v25 = vpop.f32.mrb[3].mxu0 }
 0x1a4   : > { %553 = shalt.err (!%p550_p6)
}
 0x1a5   : > { %s554_s11 = scalar_lea.hbm %s788_s21, 256  ;;  %s558_s27 = scalar_lea.hbm %s839_s4, 512 }
 0x1a6   : > { %p555_p4 = scmp.ne.s32.totalorder %s788_s21, %s554_s11  ;;  %p559_p1 = scmp.lt.u32.totalorder %s788_s21, %s839_s4 }
 0x1a7   : > { %p560_p2 = scmp.lt.u32.totalorder %s558_s27, %s554_s11  ;;  %p562_p8 = scmp.lt.u32.totalorder %s554_s11, %s788_s21 }
 0x1a8   : > { %p556_p10 = pnand %p555_p4, %p848_p9 }
 0x1a9   : > { %p561_p5 = por %p560_p2, %p559_p1 }
 0x1aa   : > { %p557_p12 = pneg %p556_p10 }
 0x1ab   : > { %p563_p11 = por %p562_p8, %p561_p5 }
 0x1ad   : > { %p564_p0 = pnand %p563_p11, %p557_p12 }
 0x1af   : > { %567 = shalt.err (!%p564_p0)
}
 0x1b0   : > { %447 = dma.vmem_to_hbm [thread:$0]  (%p848_p9), %s783_s5, 256, %s788_s21, %s326_s22  }
 0x1b1 PF: > { %s354_s6 = sand.u32 1, %s602_s15   ;;  %p849_p7 = scmp.ne.s32.totalorder %s844_s30, 0 }
 0x1b2   : > { %p850_p13 = scmp.ge.s32.totalorder %s622_s20, 2  ;;  %s355_s7 = scalar_lea.sflag [#allocation4], %s354_s6 }
 0x1b4   : > { %p454_p3 = pnand %p850_p13, %p849_p7 }
 0x1b6   : > { %597 = dma.done.wait (!%p454_p3), %s355_s7, 256  }
 0x1b7   : > { %599 = vsyncadd (!%p454_p3), %s355_s7, 4294967040  ;;  %s20_s20 = sadd.s32 1, %s622_s20   ;;  %s851_s15 = smov %s606_s16 }
 0x1b8   : > { %p17_p6 = scmp.ge.s32.totalorder %s20_s20, 4   ;;  %s852_s16 = smov %s610_s17 }
 0x1b9   : > { %s853_s17 = smov %s709_s29  ;;  %s854_s18 = smov %s618_s19 }
 0x1ba   : > { %s855_s19 = smov %s857_s23  ;;  %19 = sbr.rel (!%p17_p6) target bundleno = 6 (0x6), region = 81 }
 0x1c1   :  { %360 = vsyncpa [#allocation3], 1 }
 0x1c2   :  { %362 = vsyncpa [#allocation3 + $0x1], 1 }
 0x1c3   :  { %363 = vsyncpa [#allocation4], 1 }
 0x1c4   :  { %365 = vsyncpa [#allocation4 + $0x1], 1 }

</bundles_post_ra>
